<compile_context>
chip_gen: v5e
topology: v5e:2x2
jax: 0.10.0
libtpu: 0.0.40
codegen_flags: <defaults>
</compile_context>

<pallas_src>
import jax
import jax.numpy as jnp
from jax.experimental import pallas as pl
from jax.experimental.pallas import tpu as pltpu

IN_FEATURES = 8
OUT_FEATURES = 16


def _linear_add_kernel(x_ref, wbo_ref, o_ref):
    # x_ref:   (B, 8)
    # wbo_ref: (9, 16)  -- rows 0..7 = W^T, row 8 = bias + other (packed once)
    # o_ref:   (B, 16)
    w_t = wbo_ref[0:IN_FEATURES, :]                       # (8, 16) static slice
    bias_other = wbo_ref[IN_FEATURES:IN_FEATURES + 1, :]  # (1, 16) static slice
    acc = jnp.dot(x_ref[...], w_t, preferred_element_type=jnp.float32)
    o_ref[...] = (acc + bias_other).astype(o_ref.dtype)


def make_linear_add(w, b, other):
    """Builds the fused forward.  Constant packing happens ONCE here
    (module-init time), not per call:  wbo = [W^T ; b + other]  -> (9, 16)."""
    wbo = jnp.concatenate(
        [w.T.astype(jnp.float32),
         (b.reshape(1, OUT_FEATURES) + other).astype(jnp.float32)],
        axis=0,
    )  # (9, 16)

    vmem_spec = pl.BlockSpec(memory_space=pltpu.MemorySpace.VMEM)

    def forward(x):
        B = x.shape[0]
        return pl.pallas_call(
            _linear_add_kernel,
            out_shape=jax.ShapeDtypeStruct((B, OUT_FEATURES), x.dtype),
            in_specs=[vmem_spec, vmem_spec],
            out_specs=vmem_spec,
        )(x, wbo)

    return forward


if __name__ == "__main__":
    key = jax.random.PRNGKey(0)
    k_x, k_w, k_b, k_other = jax.random.split(key, 4)

    # Module inputs / parameters (deterministic, shapes per the PyTorch module).
    x1 = jax.random.normal(k_x, (1, IN_FEATURES), dtype=jnp.float32)                   # (1, 8)
    w = jax.random.normal(k_w, (OUT_FEATURES, IN_FEATURES), dtype=jnp.float32) * 0.1   # Linear weight (16, 8)
    b = jax.random.normal(k_b, (OUT_FEATURES,), dtype=jnp.float32) * 0.1               # Linear bias (16,)
    t5 = jax.random.normal(k_other, (1, OUT_FEATURES), dtype=jnp.float32)              # self.other (1, 16)

    # "Module construction": constants packed once, outside the per-call path.
    linear_add = make_linear_add(w, b, t5)

    out = linear_add(x1)
    jax.block_until_ready(out)

    # Reference check in plain JAX.
    ref = x1 @ w.T + b + t5
    assert out.shape == (1, OUT_FEATURES)
    assert jnp.allclose(out, ref, atol=1e-5), "mismatch vs reference"

    print("KERNEL_OK")
</pallas_src>

<mosaic_0001>
module attributes {stable_mosaic.version = 11 : i64} {
  func.func @_linear_add_kernel(%arg0: memref<1x8xf32, #tpu.memory_space<vmem>>, %arg1: memref<9x16xf32, #tpu.memory_space<vmem>>, %arg2: memref<1x16xf32, #tpu.memory_space<vmem>>) attributes {dimension_semantics = [], scalar_prefetch = 0 : i64, scratch_operands = 0 : i64, tpu.core_type = #tpu.core_type<tc>} {
    %c0 = arith.constant 0 : index
    %c0_0 = arith.constant 0 : index
    %0 = vector.load %arg1[%c0, %c0_0] : memref<9x16xf32, #tpu.memory_space<vmem>>, vector<8x16xf32>
    %c8 = arith.constant 8 : index
    %c0_1 = arith.constant 0 : index
    %1 = vector.load %arg1[%c8, %c0_1] : memref<9x16xf32, #tpu.memory_space<vmem>>, vector<1x16xf32>
    %c0_2 = arith.constant 0 : index
    %c0_3 = arith.constant 0 : index
    %2 = vector.load %arg0[%c0_2, %c0_3] : memref<1x8xf32, #tpu.memory_space<vmem>>, vector<1x8xf32>
    %cst = arith.constant dense<0.000000e+00> : vector<1x16xf32>
    %3 = tpu.matmul %2, %0, %cst {dimension_numbers = #tpu.dot_dimension_numbers<[1], [0], [0], [1], [0, 0, 1, 1], [], []>} : vector<1x8xf32>, vector<8x16xf32>, vector<1x16xf32> -> vector<1x16xf32>
    %4 = arith.addf %3, %1 : vector<1x16xf32>
    %c0_4 = arith.constant 0 : index
    %c0_5 = arith.constant 0 : index
    %5 = vector.load %arg2[%c0_4, %c0_5] : memref<1x16xf32, #tpu.memory_space<vmem>>, vector<1x16xf32>
    tpu.vector_store %arg2[%c0_4, %c0_5], %4 {strides = array<i32>} : memref<1x16xf32, #tpu.memory_space<vmem>>, vector<1x16xf32>,
    return
  }
}

</mosaic_0001>

<bundles_post_ra>
// kernel: tpu_custom_call.1
= control target key start
LH: loop header
LB: loop body
LE: loop exit
PB: predicated region body
PF: predicated region fallthrough
CT: control target
= control target key end

     0   :  { %7 = vsyncpa [#allocation3], 0  ;;  %s202_s0 = inlined_call_operand.hbm [shape: f32[1,8], index: 0, kind: input, shape index: {}]   ;;  %s203_s1 = inlined_call_operand.hbm [shape: f32[9,16], index: 1, kind: input, shape index: {}]   ;;  %s204_s2 = inlined_call_operand.hbm [shape: f32[1,16], index: 2, kind: output, shape index: {}]  }
   0x1   :  { %8 = vsyncpa [#allocation6], 0 }
   0x2   :  { %9 = vsyncpa [#allocation4], 0  ;;  %s15_s11 = sshll.u32 %s202_s0, 4  ;;  %s173_s12 = smov [#allocation2]   ;;  %s16_s11 = int_to_ptr.hbm [resolvable:$true] %s15_s11 }
   0x3   :  { %s17_s13 = sshll.u32 %s173_s12, 4  ;;  %s25_s16 = sshll.u32 %s203_s1, 4  ;;  %s18_s13 = int_to_ptr.vmem [resolvable:$true] %s17_s13  ;;  %s26_s16 = int_to_ptr.hbm [resolvable:$true] %s25_s16 }
   0x4   :  { %20 = dma.hbm_to_vmem [thread:$0]  %s16_s11, 16, %s18_s13, [#allocation3]  }
   0x5   :  { %s174_s17 = smov [#allocation5]   ;;  %s175_s19 = smov 128  }
   0x6   :  { %s27_s18 = sshll.u32 %s174_s17, 4  ;;  %s176_s20 = smov 8   ;;  %s28_s18 = int_to_ptr.vmem [resolvable:$true] %s27_s18 }
   0x7   :  { %33 = dma.hbm_to_vmem [thread:$0]  %s26_s16, 256, %s28_s18, [#allocation6], %s175_s19, %s175_s19, %s176_s20  }
   0x8   :  { %167 = dma.done.wait [#allocation3], 16  }
   0x9   :  { %168 = vsyncadd [#allocation3], 4294967280 }
   0xa   :  { %169 = dma.done.wait [#allocation6], 256  }
   0xb   :  { %170 = vsyncadd [#allocation6], 4294967040  ;;  %vm45_vm0 = vcmask 64512   ;;  %v42_v0 = vld [vmem:[#allocation5] sm:$0xff]  ;;  %v44_v1 = vld [vmem:[#allocation2] sm:$0x1] }
   0xc   :  { %64 = vmatpush.msra.mxu0 %v42_v0  ;;  %v43_v2 = vld [vmem:[#allocation5 + $0x8] sm:$0x1]  ;;  %s177_s0 = smov [#allocation7]   ;;  %s78_s23 = sshll.u32 %s204_s2, 4  ;;  %vm69_vm1 = vcmask 122880   ;;  %s79_s23 = int_to_ptr.hbm [resolvable:$true] %s78_s23 }
   0xd   :  { %89 = vmatmul.msk.f32.vlgmr.msra.gmra.mxu0 %vm45_vm0, %v44_v1  ;;  %s76_s1 = sshll.u32 %s177_s0, 4  ;;  %s77_s1 = int_to_ptr.vmem [resolvable:$true] %s76_s1 }
  0x8a   :  { %v66_v3 = vpop.f32.mrf.mxu0 }
  0x8b   :  { %v67_v4 = vadd.f32 %v66_v3, %v43_v2 }
  0x8d   :  { %70 = vst.msk [vmem:[#allocation7] sm:$0x1] %vm69_vm1, %v67_v4 }
  0x8e   :  { %81 = dma.vmem_to_hbm [thread:$0]  %s77_s1, 16, %s79_s23, [#allocation4]  }
  0x8f   :  { %171 = dma.done.wait [#allocation4], 16  }
  0x90   :  { %172 = vsyncadd [#allocation4], 4294967280 }
  0x91   :  { %86 = vsyncpa [#allocation3], 1 }
  0x92   :  { %87 = vsyncpa [#allocation6], 1 }
  0x93   :  { %88 = vsyncpa [#allocation4], 1 }

</bundles_post_ra>
